<compile_context>
chip_gen: v6e
topology: v6e:2x2x1
jax: 0.10.0
libtpu: 0.0.40
codegen_flags: <defaults>
</compile_context>

<pallas_src>
import functools

import jax
import jax.numpy as jnp
from jax import lax
from jax.experimental import pallas as pl
from jax.experimental.pallas import tpu as pltpu


LANE = 128
SUBLANE = 8
EPS = 1e-5


def _round_up(n, m):
    return ((n + m - 1) // m) * m


def _pad_to(a, shape):
    pads = [(0, s - d) for d, s in zip(a.shape, shape)]
    if all(p == (0, 0) for p in pads):
        return a
    return jnp.pad(a, pads)


def _vmem_limit_bytes():
    """Physical VMEM minus headroom for compiler-internal scratch."""
    try:
        cap = int(pltpu.get_tpu_info().vmem_capacity_bytes)
    except Exception:
        cap = 64 * 1024 * 1024          # conservative (v7x-sized) fallback
    return max(cap - 12 * 1024 * 1024, 32 * 1024 * 1024)


def mlp_base_kernel(x_ref, w1_ref, bgb_ref, w2_ref, o_ref, *,
                    inv_b, real_b, padded_b):
    """One grid step: (core-split c, hidden-tile j)."""
    j = pl.program_id(1)

    @pl.when(j == 0)
    def _init():
        o_ref[0] = jnp.zeros(o_ref.shape[1:], o_ref.dtype)

    # ---- Linear1 for this hidden tile (MXU, f32 accumulation) ----
    h = jnp.dot(x_ref[...], w1_ref[...], preferred_element_type=jnp.float32)
    p = bgb_ref[...]                     # (3, th) f32: b1 / gamma / beta
    b1, gamma, beta = p[0:1, :], p[1:2, :], p[2:3, :]
    h = h + b1

    # ---- BatchNorm1d (training mode) per-feature batch statistics ----
    # Shifted single-pass moments (centred on row 0) avoid E[x^2]-E[x]^2
    # cancellation; the axis-0 reduction stays on the VPU/XLU so the MXU is
    # reserved for the two matmuls.  Everything here is f32.
    c0 = h[0:1, :]
    hc = h - c0
    if real_b != padded_b:
        # Zero-row batch padding gives h == b1 on the padded rows -> mask
        # them out of the moments.  inv_b is 1 / real_b.
        row = lax.broadcasted_iota(jnp.int32, (padded_b, 1), 0)
        mask = (row < real_b).astype(jnp.float32)
        hc_m = hc * mask
        s1 = jnp.sum(hc_m, axis=0, keepdims=True)
        s2 = jnp.sum(hc_m * hc, axis=0, keepdims=True)
    else:
        s1 = jnp.sum(hc, axis=0, keepdims=True)
        s2 = jnp.sum(hc * hc, axis=0, keepdims=True)
    mean_c = s1 * inv_b
    var = jnp.maximum(s2 * inv_b - mean_c * mean_c, 0.0)   # biased variance
    scale = gamma * lax.rsqrt(var + EPS)                    # folded BN
    shift = beta - (mean_c + c0) * scale

    # ---- ReLU + Linear2 partial product, accumulated into the resident
    #      output block across the hidden-tile ("arbitrary") axis ----
    a = jnp.maximum(h * scale + shift, 0.0).astype(w2_ref.dtype)
    o_ref[0] += jnp.dot(a, w2_ref[...], preferred_element_type=jnp.float32)


def prepare_mlp_base_params(w1, b1, gamma, beta, w2, b2, *,
                            hidden_tile=1024, num_core_splits=1,
                            matmul_dtype=None):
    """Pad + (optionally) cast the weights ONCE; reuse across forward calls.

    w1: (Inp, Hidden), w2: (Hidden, Proj)   (already transposed for x @ w)
    b1/gamma/beta: (1, Hidden); b2: (1, Proj).

    matmul_dtype: jnp.bfloat16 is recommended at production shapes on all of
      v5e/v6e/v7x (bf16-native MXU, half the weight HBM traffic); BN/ReLU
      elementwise math stays f32 either way.  None keeps f32 matmul operands
      (tightest numerics; used by the small self-test below).
    num_core_splits: 2 on v7x splits the hidden tiles across both TensorCores
      via a leading "parallel" grid axis (partials summed outside).
    """
    inp, hidden = w1.shape
    proj = w2.shape[1]

    inp_p = _round_up(inp, LANE)
    proj_p = _round_up(proj, LANE)

    w_dtype = jnp.float32 if matmul_dtype is None else matmul_dtype
    itemsize = jnp.dtype(w_dtype).itemsize

    # Biggest hidden tile that leaves the double-buffered w1/w2 tiles well
    # inside VMEM (the auto-shrink mostly matters on v7x's 64 MiB VMEM).
    budget = _vmem_limit_bytes()
    th = min(_round_up(hidden, LANE), _round_up(hidden_tile, LANE))
    while th > LANE and 2 * (inp_p * th + th * proj_p) * itemsize > 0.6 * budget:
        th = max((th // 2) // LANE * LANE, LANE)

    hidden_p = _round_up(hidden, th * num_core_splits)
    tiles_per_core = hidden_p // (th * num_core_splits)

    # Zero padding is exact: padded input columns hit zero w1 rows; padded
    # hidden features have b1 = gamma = beta = 0 so they normalise to exactly
    # 0 and feed zero rows of w2; padded projection columns are sliced off.
    w1_p = _pad_to(w1, (inp_p, hidden_p)).astype(w_dtype)
    w2_p = _pad_to(w2, (hidden_p, proj_p)).astype(w_dtype)
    bgb_p = _pad_to(jnp.concatenate([b1, gamma, beta], axis=0)
                    .astype(jnp.float32), (3, hidden_p))

    return dict(
        w1=w1_p, w2=w2_p, bgb=bgb_p, b2=b2.astype(jnp.float32),
        inp=inp, proj=proj, inp_p=inp_p, proj_p=proj_p,
        th=th, tiles_per_core=tiles_per_core,
        num_core_splits=num_core_splits,
        matmul_dtype=matmul_dtype, vmem_limit=int(budget),
    )


def mlp_base_forward(x, params):
    """BYOL MLP_Base forward: Linear2(relu(BatchNorm1d(Linear1(x)))).

    x: (B, Inp) f32.  B is zero-row padded to a sublane multiple (8, or 16
    for bf16 operands); BN moments mask the padded rows and the padded output
    rows are sliced off.  For good MXU row utilisation prefer B >= 128 (v5e)
    / >= 256 (v6e/v7x).
    """
    B, inp = x.shape
    assert inp == params["inp"], "input feature mismatch"

    mdt = params["matmul_dtype"]
    row_mult = 16 if mdt == jnp.bfloat16 else SUBLANE
    b_p = _round_up(B, row_mult)

    x_p = _pad_to(x.astype(jnp.float32), (b_p, params["inp_p"]))
    if mdt is not None:
        x_p = x_p.astype(mdt)            # pre-cast once, outside the kernel

    th = params["th"]
    tiles_per_core = params["tiles_per_core"]
    num_cores = params["num_core_splits"]
    inp_p, proj_p = params["inp_p"], params["proj_p"]

    def tile_of(c, j):
        return c * tiles_per_core + j

    kernel = functools.partial(
        mlp_base_kernel, inv_b=float(1.0 / B), real_b=B, padded_b=b_p)

    partials = pl.pallas_call(
        kernel,
        out_shape=jax.ShapeDtypeStruct((num_cores, b_p, proj_p), jnp.float32),
        grid_spec=pltpu.PrefetchScalarGridSpec(
            num_scalar_prefetch=0,
            grid=(num_cores, tiles_per_core),
            in_specs=[
                pl.BlockSpec((b_p, inp_p), lambda c, j: (0, 0)),             # x
                pl.BlockSpec((inp_p, th), lambda c, j: (0, tile_of(c, j))),  # w1
                pl.BlockSpec((3, th), lambda c, j: (0, tile_of(c, j))),      # b1/gamma/beta
                pl.BlockSpec((th, proj_p), lambda c, j: (tile_of(c, j), 0)),  # w2
            ],
            out_specs=pl.BlockSpec((1, b_p, proj_p), lambda c, j: (c, 0, 0)),
        ),
        compiler_params=pltpu.CompilerParams(
            # Output accumulates across the hidden-tile axis -> "arbitrary";
            # leading core-split axis is independent -> "parallel".
            dimension_semantics=("parallel", "arbitrary"),
            vmem_limit_bytes=params["vmem_limit"],
        ),
    )(x_p, params["w1"], params["bgb"], params["w2"])

    out = partials[0] if num_cores == 1 else jnp.sum(partials, axis=0)
    # Tiny epilogue: bias add + strip the batch/lane padding.
    return out[:B, :params["proj"]] + params["b2"]


def reference_forward(x, w1, b1, gamma, beta, w2, b2):
    h = x @ w1 + b1
    mean = jnp.mean(h, axis=0, keepdims=True)
    var = jnp.mean((h - mean) ** 2, axis=0, keepdims=True)
    hn = (h - mean) / jnp.sqrt(var + EPS) * gamma + beta
    return jnp.maximum(hn, 0.0) @ w2 + b2


if __name__ == "__main__":
    # Small shapes consistent with the module: Inp=32, Hidden=64, Projection=16.
    Inp, Hidden, Proj = 32, 64, 16

    key = jax.random.PRNGKey(0)
    kx, k1, k2, k3, k4 = jax.random.split(key, 5)

    bound1 = 1.0 / (Inp ** 0.5)
    w1 = jax.random.uniform(k1, (Inp, Hidden), jnp.float32, -bound1, bound1)
    b1 = jax.random.uniform(k2, (1, Hidden), jnp.float32, -bound1, bound1)
    gamma = jnp.ones((1, Hidden), jnp.float32)    # BatchNorm1d weight
    beta = jnp.zeros((1, Hidden), jnp.float32)    # BatchNorm1d bias
    bound2 = 1.0 / (Hidden ** 0.5)
    w2 = jax.random.uniform(k3, (Hidden, Proj), jnp.float32, -bound2, bound2)
    b2 = jax.random.uniform(k4, (1, Proj), jnp.float32, -bound2, bound2)

    # --- f32 operands, aligned batch, single core split: tight check ---
    B = 8
    x = jax.random.normal(kx, (B, Inp), dtype=jnp.float32)
    params_f32 = prepare_mlp_base_params(
        w1, b1, gamma, beta, w2, b2,
        hidden_tile=1024, num_core_splits=1, matmul_dtype=None)
    out = jax.block_until_ready(mlp_base_forward(x, params_f32))
    ref = reference_forward(x, w1, b1, gamma, beta, w2, b2)
    assert out.shape == (B, Proj)
    assert jnp.allclose(out, ref, atol=1e-4, rtol=1e-4), "f32 mismatch"

    # --- bf16 matmul operands, ragged batch, 2-way core split (v7x layout):
    #     looser tolerance because the weights are pre-cast to bfloat16 ---
    B2 = 6
    x2 = jax.random.normal(kx, (B2, Inp), dtype=jnp.float32)
    params_bf16 = prepare_mlp_base_params(
        w1, b1, gamma, beta, w2, b2,
        hidden_tile=1024, num_core_splits=2, matmul_dtype=jnp.bfloat16)
    out2 = jax.block_until_ready(mlp_base_forward(x2, params_bf16))
    ref2 = reference_forward(x2, w1, b1, gamma, beta, w2, b2)
    assert out2.shape == (B2, Proj)
    assert jnp.allclose(out2, ref2, atol=1e-1, rtol=1e-1), "bf16 mismatch"

    print("KERNEL_OK")
</pallas_src>

<mosaic_0001>
module attributes {stable_mosaic.version = 11 : i64} {
  func.func @mlp_base_kernel(%arg0: i32, %arg1: i32, %arg2: memref<8x128xf32, #tpu.memory_space<vmem>>, %arg3: memref<128x128xf32, #tpu.memory_space<vmem>>, %arg4: memref<3x128xf32, #tpu.memory_space<vmem>>, %arg5: memref<128x128xf32, #tpu.memory_space<vmem>>, %arg6: memref<1x8x128xf32, #tpu.memory_space<vmem>>) attributes {dimension_semantics = [#tpu.dimension_semantics<parallel>, #tpu.dimension_semantics<arbitrary>], iteration_bounds = array<i64: 1, 1>, scalar_prefetch = 0 : i64, scratch_operands = 0 : i64, tpu.core_type = #tpu.core_type<tc>, window_params = [{pipeline_mode = #tpu.pipeline_mode<synchronous>, transform_indices = @transform_0, window_bounds = array<i64: 8, 128>}, {transform_indices = @transform_1, window_bounds = array<i64: 128, 128>}, {transform_indices = @transform_2, window_bounds = array<i64: 3, 128>}, {transform_indices = @transform_3, window_bounds = array<i64: 128, 128>}, {transform_indices = @transform_4, window_bounds = array<i64: 1, 8, 128>}]} {
    %c0_i32 = arith.constant 0 : i32
    %0 = arith.cmpi eq, %arg1, %c0_i32 : i32
    %1 = arith.extui %0 : i1 to i32
    %c0_i32_0 = arith.constant 0 : i32
    %2 = arith.cmpi ne, %1, %c0_i32_0 : i32
    scf.if %2 {
      %cst_22 = arith.constant 0.000000e+00 : f32
      %49 = vector.broadcast %cst_22 : f32 to vector<8x128xf32>
      %c0_23 = arith.constant 0 : index
      %c0_24 = arith.constant 0 : index
      %c0_25 = arith.constant 0 : index
      %50 = vector.load %arg6[%c0_23, %c0_24, %c0_25] : memref<1x8x128xf32, #tpu.memory_space<vmem>>, vector<1x8x128xf32>
      %51 = vector.shape_cast %50 : vector<1x8x128xf32> to vector<8x128xf32>
      %52 = vector.shape_cast %49 : vector<8x128xf32> to vector<1x8x128xf32>
      tpu.vector_store %arg6[%c0_23, %c0_24, %c0_25], %52 {strides = array<i32>} : memref<1x8x128xf32, #tpu.memory_space<vmem>>, vector<1x8x128xf32>,
    } else {
    }
    %c0 = arith.constant 0 : index
    %c0_1 = arith.constant 0 : index
    %3 = vector.load %arg2[%c0, %c0_1] : memref<8x128xf32, #tpu.memory_space<vmem>>, vector<8x128xf32>
    %c0_2 = arith.constant 0 : index
    %c0_3 = arith.constant 0 : index
    %4 = vector.load %arg3[%c0_2, %c0_3] : memref<128x128xf32, #tpu.memory_space<vmem>>, vector<128x128xf32>
    %cst = arith.constant dense<0.000000e+00> : vector<8x128xf32>
    %5 = tpu.matmul %3, %4, %cst {dimension_numbers = #tpu.dot_dimension_numbers<[1], [0], [0], [1], [0, 0, 1, 1], [], []>} : vector<8x128xf32>, vector<128x128xf32>, vector<8x128xf32> -> vector<8x128xf32>
    %c0_4 = arith.constant 0 : index
    %c0_5 = arith.constant 0 : index
    %6 = vector.load %arg4[%c0_4, %c0_5] : memref<3x128xf32, #tpu.memory_space<vmem>>, vector<3x128xf32>
    %7 = vector.extract_strided_slice %6 {offsets = [0, 0], sizes = [1, 128], strides = [1, 1]} : vector<3x128xf32> to vector<1x128xf32>
    %8 = vector.extract_strided_slice %6 {offsets = [1, 0], sizes = [1, 128], strides = [1, 1]} : vector<3x128xf32> to vector<1x128xf32>
    %9 = vector.extract_strided_slice %6 {offsets = [2, 0], sizes = [1, 128], strides = [1, 1]} : vector<3x128xf32> to vector<1x128xf32>
    %10 = vector.broadcast %7 : vector<1x128xf32> to vector<8x128xf32>
    %11 = arith.addf %5, %10 : vector<8x128xf32>
    %12 = vector.extract_strided_slice %11 {offsets = [0, 0], sizes = [1, 128], strides = [1, 1]} : vector<8x128xf32> to vector<1x128xf32>
    %13 = vector.broadcast %12 : vector<1x128xf32> to vector<8x128xf32>
    %14 = arith.subf %11, %13 : vector<8x128xf32>
    %cst_6 = arith.constant dense<0.000000e+00> : vector<128xf32>
    %15 = vector.multi_reduction <add>, %14, %cst_6 [0] : vector<8x128xf32> to vector<128xf32>
    %16 = vector.shape_cast %15 : vector<128xf32> to vector<1x128xf32>
    %17 = arith.mulf %14, %14 : vector<8x128xf32>
    %cst_7 = arith.constant dense<0.000000e+00> : vector<128xf32>
    %18 = vector.multi_reduction <add>, %17, %cst_7 [0] : vector<8x128xf32> to vector<128xf32>
    %19 = vector.shape_cast %18 : vector<128xf32> to vector<1x128xf32>
    %cst_8 = arith.constant 1.250000e-01 : f32
    %20 = vector.broadcast %cst_8 : f32 to vector<1x128xf32>
    %21 = arith.mulf %16, %20 : vector<1x128xf32>
    %cst_9 = arith.constant 1.250000e-01 : f32
    %22 = vector.broadcast %cst_9 : f32 to vector<1x128xf32>
    %23 = arith.mulf %19, %22 : vector<1x128xf32>
    %24 = arith.mulf %21, %21 : vector<1x128xf32>
    %25 = arith.subf %23, %24 : vector<1x128xf32>
    %cst_10 = arith.constant 0.000000e+00 : f32
    %26 = vector.broadcast %cst_10 : f32 to vector<1x128xf32>
    %27 = arith.maximumf %25, %26 : vector<1x128xf32>
    %cst_11 = arith.constant 9.99999974E-6 : f32
    %28 = vector.broadcast %cst_11 : f32 to vector<1x128xf32>
    %29 = arith.addf %27, %28 : vector<1x128xf32>
    %30 = math.rsqrt %29 : vector<1x128xf32>
    %31 = arith.mulf %8, %30 : vector<1x128xf32>
    %32 = arith.addf %21, %12 : vector<1x128xf32>
    %33 = arith.mulf %32, %31 : vector<1x128xf32>
    %34 = arith.subf %9, %33 : vector<1x128xf32>
    %35 = vector.broadcast %31 : vector<1x128xf32> to vector<8x128xf32>
    %36 = arith.mulf %11, %35 : vector<8x128xf32>
    %37 = vector.broadcast %34 : vector<1x128xf32> to vector<8x128xf32>
    %38 = arith.addf %36, %37 : vector<8x128xf32>
    %cst_12 = arith.constant 0.000000e+00 : f32
    %39 = vector.broadcast %cst_12 : f32 to vector<8x128xf32>
    %40 = arith.maximumf %38, %39 : vector<8x128xf32>
    %c0_13 = arith.constant 0 : index
    %c0_14 = arith.constant 0 : index
    %c0_15 = arith.constant 0 : index
    %41 = vector.load %arg6[%c0_13, %c0_14, %c0_15] : memref<1x8x128xf32, #tpu.memory_space<vmem>>, vector<1x8x128xf32>
    %42 = vector.shape_cast %41 : vector<1x8x128xf32> to vector<8x128xf32>
    %c0_16 = arith.constant 0 : index
    %c0_17 = arith.constant 0 : index
    %43 = vector.load %arg5[%c0_16, %c0_17] : memref<128x128xf32, #tpu.memory_space<vmem>>, vector<128x128xf32>
    %cst_18 = arith.constant dense<0.000000e+00> : vector<8x128xf32>
    %44 = tpu.matmul %40, %43, %cst_18 {dimension_numbers = #tpu.dot_dimension_numbers<[1], [0], [0], [1], [0, 0, 1, 1], [], []>} : vector<8x128xf32>, vector<128x128xf32>, vector<8x128xf32> -> vector<8x128xf32>
    %45 = arith.addf %42, %44 : vector<8x128xf32>
    %c0_19 = arith.constant 0 : index
    %c0_20 = arith.constant 0 : index
    %c0_21 = arith.constant 0 : index
    %46 = vector.load %arg6[%c0_19, %c0_20, %c0_21] : memref<1x8x128xf32, #tpu.memory_space<vmem>>, vector<1x8x128xf32>
    %47 = vector.shape_cast %46 : vector<1x8x128xf32> to vector<8x128xf32>
    %48 = vector.shape_cast %45 : vector<8x128xf32> to vector<1x8x128xf32>
    tpu.vector_store %arg6[%c0_19, %c0_20, %c0_21], %48 {strides = array<i32>} : memref<1x8x128xf32, #tpu.memory_space<vmem>>, vector<1x8x128xf32>,
    return
  }
  func.func @transform_0(%arg0: i32, %arg1: i32) -> (i32, i32) {
    %c0_i32 = arith.constant 0 : i32
    %c0_i32_0 = arith.constant 0 : i32
    %c0_i32_1 = arith.constant 0 : i32
    return %c0_i32, %c0_i32_0 : i32, i32
  }
  func.func @transform_1(%arg0: i32, %arg1: i32) -> (i32, i32) {
    %c1_i32 = arith.constant 1 : i32
    %0 = arith.muli %arg0, %c1_i32 : i32
    %1 = arith.addi %0, %arg1 : i32
    %c0_i32 = arith.constant 0 : i32
    %c0_i32_0 = arith.constant 0 : i32
    return %c0_i32, %1 : i32, i32
  }
  func.func @transform_2(%arg0: i32, %arg1: i32) -> (i32, i32) {
    %c1_i32 = arith.constant 1 : i32
    %0 = arith.muli %arg0, %c1_i32 : i32
    %1 = arith.addi %0, %arg1 : i32
    %c0_i32 = arith.constant 0 : i32
    %c0_i32_0 = arith.constant 0 : i32
    return %c0_i32, %1 : i32, i32
  }
  func.func @transform_3(%arg0: i32, %arg1: i32) -> (i32, i32) {
    %c1_i32 = arith.constant 1 : i32
    %0 = arith.muli %arg0, %c1_i32 : i32
    %1 = arith.addi %0, %arg1 : i32
    %c0_i32 = arith.constant 0 : i32
    %c0_i32_0 = arith.constant 0 : i32
    return %1, %c0_i32 : i32, i32
  }
  func.func @transform_4(%arg0: i32, %arg1: i32) -> (i32, i32, i32) {
    %c0_i32 = arith.constant 0 : i32
    %c0_i32_0 = arith.constant 0 : i32
    %c0_i32_1 = arith.constant 0 : i32
    return %arg0, %c0_i32, %c0_i32_0 : i32, i32, i32
  }
}

</mosaic_0001>

<bundles_post_ra>
// kernel: tpu_custom_call.1
= control target key start
LH: loop header
LB: loop body
LE: loop exit
PB: predicated region body
PF: predicated region fallthrough
CT: control target
= control target key end

     0   :  { %9 = vsyncpa [#allocation3], 0  ;;  %s644_s0 = inlined_call_operand.hbm [shape: f32[8,128], index: 0, kind: input, shape index: {}]   ;;  %s645_s1 = inlined_call_operand.hbm [shape: f32[128,128], index: 1, kind: input, shape index: {}]   ;;  %s646_s2 = inlined_call_operand.hbm [shape: f32[3,128], index: 2, kind: input, shape index: {}]   ;;  %s647_s3 = inlined_call_operand.hbm [shape: f32[128,128], index: 3, kind: input, shape index: {}]   ;;  %s648_s4 = inlined_call_operand.hbm [shape: f32[1,8,128], index: 4, kind: output, shape index: {}]  }
   0x1   :  { %10 = vsyncpa [#allocation6], 0 }
   0x2   :  { %11 = vsyncpa [#allocation9], 0 }
   0x3   :  { %12 = vsyncpa [#allocation4], 0  ;;  %s555_s15 = smov [#allocation5]  }
   0x4   :  { %s31_s16 = sshll.u32 %s555_s15, 4  ;;  %s32_s16 = int_to_ptr.vmem [resolvable:$true] %s31_s16 }
   0x5   :  { %s455_s17 = scalar_lea.vmem %s32_s16, 2048  ;;  %p460_p1 = scmp.lt.s32.totalorder %s32_s16, %s32_s16 }
   0x6   :  { %p456_p0 = scmp.ne.s32.totalorder %s32_s16, %s455_s17  ;;  %p461_p2 = scmp.lt.s32.totalorder %s455_s17, %s455_s17 }
   0x8   :  { %p462_p3 = por %p461_p2, %p460_p1 }
   0xa   :  { %p463_p4 = pnand %p462_p3, %p456_p0 }
   0xc   :  { %466 = shalt.err (!%p463_p4)
}
   0xd   :  { %s556_s18 = smov 128   ;;  %s557_s19 = smov 8  }
   0xe   :  { %37 = dma.hbm_to_vmem [thread:$0]  %s645_s1, 2048, %s32_s16, [#allocation6], %s556_s18, %s556_s18, %s557_s19  }
   0xf   :  { %s558_s22 = smov [#allocation2]   ;;  %s559_s24 = smov [#allocation7]  }
  0x10   :  { %s19_s23 = sshll.u32 %s558_s22, 4  ;;  %s47_s25 = sshll.u32 %s559_s24, 4  ;;  %s20_s23 = int_to_ptr.vmem [resolvable:$true] %s19_s23  ;;  %s48_s25 = int_to_ptr.vmem [resolvable:$true] %s47_s25 }
  0x11   :  { %s475_s26 = scalar_lea.vmem %s20_s23, 128  ;;  %p480_p6 = scmp.lt.s32.totalorder %s20_s23, %s20_s23 }
  0x12   :  { %p476_p5 = scmp.ne.s32.totalorder %s20_s23, %s475_s26  ;;  %p481_p7 = scmp.lt.s32.totalorder %s475_s26, %s475_s26 }
  0x14   :  { %p482_p8 = por %p481_p7, %p480_p6 }
  0x16   :  { %p483_p9 = pnand %p482_p8, %p476_p5 }
  0x18   :  { %486 = shalt.err (!%p483_p9)
}
  0x19   :  { %22 = dma.hbm_to_vmem [thread:$0]  %s644_s0, 128, %s20_s23, [#allocation3]  }
  0x1a   :  { %s495_s29 = scalar_lea.vmem %s48_s25, 64  ;;  %p500_p11 = scmp.lt.s32.totalorder %s48_s25, %s48_s25 }
  0x1b   :  { %p496_p10 = scmp.ne.s32.totalorder %s48_s25, %s495_s29  ;;  %p501_p12 = scmp.lt.s32.totalorder %s495_s29, %s495_s29 }
  0x1d   :  { %p502_p13 = por %p501_p12, %p500_p11 }
  0x1f   :  { %p503_p0 = pnand %p502_p13, %p496_p10 }
  0x21   :  { %506 = shalt.err (!%p503_p0)
}
  0x22   :  { %50 = dma.hbm_to_vmem [thread:$0]  %s646_s2, 64, %s48_s25, [#allocation6]  }
  0x23   :  { %s560_s5 = smov [#allocation8]  }
  0x24   :  { %s60_s6 = sshll.u32 %s560_s5, 4  ;;  %s61_s6 = int_to_ptr.vmem [resolvable:$true] %s60_s6 }
  0x25   :  { %s515_s7 = scalar_lea.vmem %s61_s6, 2048  ;;  %p520_p2 = scmp.lt.s32.totalorder %s61_s6, %s61_s6 }
  0x26   :  { %p516_p1 = scmp.ne.s32.totalorder %s61_s6, %s515_s7  ;;  %p521_p3 = scmp.lt.s32.totalorder %s515_s7, %s515_s7 }
  0x28   :  { %p522_p4 = por %p521_p3, %p520_p2 }
  0x2a   :  { %p523_p5 = pnand %p522_p4, %p516_p1 }
  0x2c   :  { %526 = shalt.err (!%p523_p5)
}
  0x2d   :  { %66 = dma.hbm_to_vmem [thread:$0]  %s647_s3, 2048, %s61_s6, [#allocation9], %s556_s18, %s556_s18, %s557_s19  }
  0x2e   :  { %547 = dma.done.wait [#allocation3], 128  }
  0x2f   :  { %548 = vsyncadd [#allocation3], 4294967168 }
  0x30   :  { %549 = dma.done.wait [#allocation6], 2112  }
  0x31   :  { %550 = vsyncadd [#allocation6], 4294965184 }
  0x32   :  { %551 = dma.done.wait [#allocation9], 2048  }
  0x33   :  { %552 = vsyncadd [#allocation9], 4294965248  ;;  %v561_v0 = vmov 0.0   ;;  %vm562_vm0 = vmmov 0   ;;  %v104_v1 = vld [vmem:[#allocation5 + $0x78] sm:$0xff]  ;;  %v103_v2 = vld [vmem:[#allocation5 + $0x70] sm:$0xff]  ;;  %v106_v34 = vlaneseq }
  0x34   :  { %366 = vmatprep.subr.mxu0 %v561_v0  ;;  %398 = vmatprep.mubr.msk.f32.mxu0 %vm562_vm0, %v561_v0  ;;  %v102_v3 = vld [vmem:[#allocation5 + $0x68] sm:$0xff]  ;;  %v101_v4 = vld [vmem:[#allocation5 + $0x60] sm:$0xff]  ;;  %v100_v5 = vld [vmem:[#allocation5 + $0x58] sm:$0xff]  ;;  %s563_s2 = smov [#allocation10]  }
  0x35   :  { %401 = vmatprep.subr.mxu1 %v561_v0  ;;  %433 = vmatprep.mubr.msk.f32.mxu1 %vm562_vm0, %v561_v0  ;;  %v99_v6 = vld [vmem:[#allocation5 + $0x50] sm:$0xff]  ;;  %v98_v7 = vld [vmem:[#allocation5 + $0x48] sm:$0xff]  ;;  %v97_v8 = vld [vmem:[#allocation5 + $0x40] sm:$0xff]  ;;  %v107_v35 = vshrl.u32 %v106_v34, 7  ;;  %s321_s3 = sshll.u32 %s563_s2, 4  ;;  %s322_s3 = int_to_ptr.vmem [resolvable:$true] %s321_s3 }
  0x36   :  { %367 = vmatpush3.msra.mxu0 %v104_v1  ;;  %v96_v9 = vld [vmem:[#allocation5 + $0x38] sm:$0xff]  ;;  %v95_v10 = vld [vmem:[#allocation5 + $0x30] sm:$0xff]  ;;  %v94_v11 = vld [vmem:[#allocation5 + $0x28] sm:$0xff]  ;;  %s527_s9 = scalar_lea.vmem %s322_s3, 128  ;;  %p532_p7 = scmp.lt.s32.totalorder %s322_s3, %s322_s3 }
  0x37   :  { %368 = vmatprep.subr.mxu0 %v561_v0  ;;  %v93_v12 = vld [vmem:[#allocation5 + $0x20] sm:$0xff]  ;;  %v92_v13 = vld [vmem:[#allocation5 + $0x18] sm:$0xff]  ;;  %v91_v14 = vld [vmem:[#allocation5 + $0x10] sm:$0xff]  ;;  %v108_v36 = vsub.s32 0, %v107_v35  ;;  %p528_p6 = scmp.ne.s32.totalorder %s322_s3, %s527_s9  ;;  %p533_p8 = scmp.lt.s32.totalorder %s527_s9, %s527_s9 }
  0x38   :  { %369 = vmatpush3.msra.mxu0 %v103_v2  ;;  %v90_v15 = vld [vmem:[#allocation5 + $0x8] sm:$0xff]  ;;  %v89_v16 = vld [vmem:[#allocation5] sm:$0xff]  ;;  %v88_v17 = vld [vmem:[#allocation2] sm:$0xff] }
  0x39   :  { %370 = vmatprep.subr.mxu0 %v561_v0  ;;  %v242_v18 = vld [vmem:[#allocation8 + $0x78] sm:$0xff]  ;;  %v241_v19 = vld [vmem:[#allocation8 + $0x70] sm:$0xff]  ;;  %v240_v20 = vld [vmem:[#allocation8 + $0x68] sm:$0xff]  ;;  %p534_p9 = por %p533_p8, %p532_p7 }
  0x3a   :  { %371 = vmatpush3.msra.mxu0 %v102_v3  ;;  %402 = vmatpush3.msra.mxu1 %v242_v18  ;;  %v239_v21 = vld [vmem:[#allocation8 + $0x60] sm:$0xff]  ;;  %v238_v22 = vld [vmem:[#allocation8 + $0x58] sm:$0xff]  ;;  %v237_v23 = vld [vmem:[#allocation8 + $0x50] sm:$0xff]  ;;  %v217_v3 = vsub.s32 1, %v107_v35 }
  0x3b   :  { %372 = vmatprep.subr.mxu0 %v561_v0  ;;  %403 = vmatprep.subr.mxu1 %v561_v0  ;;  %v236_v24 = vld [vmem:[#allocation8 + $0x48] sm:$0xff]  ;;  %v235_v25 = vld [vmem:[#allocation8 + $0x40] sm:$0xff]  ;;  %v234_v26 = vld [vmem:[#allocation8 + $0x38] sm:$0xff]  ;;  %p535_p10 = pnand %p534_p9, %p528_p6 }
  0x3c   :  { %373 = vmatpush3.msra.mxu0 %v101_v4  ;;  %404 = vmatpush3.msra.mxu1 %v241_v19  ;;  %v233_v27 = vld [vmem:[#allocation8 + $0x30] sm:$0xff]  ;;  %v232_v28 = vld [vmem:[#allocation8 + $0x28] sm:$0xff]  ;;  %v231_v29 = vld [vmem:[#allocation8 + $0x20] sm:$0xff] }
  0x3d   :  { %374 = vmatprep.subr.mxu0 %v561_v0  ;;  %405 = vmatprep.subr.mxu1 %v561_v0  ;;  %v230_v30 = vld [vmem:[#allocation8 + $0x18] sm:$0xff]  ;;  %v229_v31 = vld [vmem:[#allocation8 + $0x10] sm:$0xff]  ;;  %v228_v32 = vld [vmem:[#allocation8 + $0x8] sm:$0xff] }
  0x3e   :  { %375 = vmatpush3.msra.mxu0 %v100_v5  ;;  %406 = vmatpush3.msra.mxu1 %v240_v20  ;;  %v227_v33 = vld [vmem:[#allocation8] sm:$0xff]  ;;  %v105_v37 = vld [vmem:[#allocation7] sm:$0x7] }
  0x3f   :  { %376 = vmatprep.subr.mxu0 %v561_v0  ;;  %407 = vmatprep.subr.mxu1 %v561_v0  ;;  %v109_v38 = vrot.slane %v105_v37, %v108_v36 }
  0x40   :  { %377 = vmatpush3.msra.mxu0 %v99_v6  ;;  %408 = vmatpush3.msra.mxu1 %v239_v21 }
  0x41   :  { %378 = vmatprep.subr.mxu0 %v561_v0  ;;  %409 = vmatprep.subr.mxu1 %v561_v0 }
  0x42   :  { %379 = vmatpush3.msra.mxu0 %v98_v7  ;;  %410 = vmatpush3.msra.mxu1 %v238_v22  ;;  %v222_v7 = vsub.s32 2, %v107_v35 }
  0x43   :  { %380 = vmatprep.subr.mxu0 %v561_v0  ;;  %411 = vmatprep.subr.mxu1 %v561_v0 }
  0x44   :  { %381 = vmatpush3.msra.mxu0 %v97_v8  ;;  %412 = vmatpush3.msra.mxu1 %v237_v23 }
  0x45   :  { %382 = vmatprep.subr.mxu0 %v561_v0  ;;  %413 = vmatprep.subr.mxu1 %v561_v0 }
  0x46   :  { %383 = vmatpush3.msra.mxu0 %v96_v9  ;;  %414 = vmatpush3.msra.mxu1 %v236_v24 }
  0x47   :  { %384 = vmatprep.subr.mxu0 %v561_v0  ;;  %415 = vmatprep.subr.mxu1 %v561_v0 }
  0x48   :  { %385 = vmatpush3.msra.mxu0 %v95_v10  ;;  %416 = vmatpush3.msra.mxu1 %v235_v25 }
  0x49   :  { %386 = vmatprep.subr.mxu0 %v561_v0  ;;  %417 = vmatprep.subr.mxu1 %v561_v0 }
  0x4a   :  { %387 = vmatpush3.msra.mxu0 %v94_v11  ;;  %418 = vmatpush3.msra.mxu1 %v234_v26 }
  0x4b   :  { %388 = vmatprep.subr.mxu0 %v561_v0  ;;  %419 = vmatprep.subr.mxu1 %v561_v0 }
  0x4c   :  { %389 = vmatpush3.msra.mxu0 %v93_v12  ;;  %420 = vmatpush3.msra.mxu1 %v233_v27 }
  0x4d   :  { %390 = vmatprep.subr.mxu0 %v561_v0  ;;  %421 = vmatprep.subr.mxu1 %v561_v0 }
  0x4e   :  { %391 = vmatpush3.msra.mxu0 %v92_v13  ;;  %422 = vmatpush3.msra.mxu1 %v232_v28 }
  0x4f   :  { %392 = vmatprep.subr.mxu0 %v561_v0  ;;  %423 = vmatprep.subr.mxu1 %v561_v0 }
  0x50   :  { %393 = vmatpush3.msra.mxu0 %v91_v14  ;;  %424 = vmatpush3.msra.mxu1 %v231_v29 }
  0x51   :  { %394 = vmatprep.subr.mxu0 %v561_v0  ;;  %425 = vmatprep.subr.mxu1 %v561_v0 }
  0x52   :  { %395 = vmatpush3.msra.mxu0 %v90_v15  ;;  %426 = vmatpush3.msra.mxu1 %v230_v30 }
  0x53   :  { %396 = vmatprep.subr.mxu0 %v561_v0  ;;  %427 = vmatprep.subr.mxu1 %v561_v0 }
  0x54   :  { %397 = vmatpush3.msra.mxu0 %v89_v16  ;;  %428 = vmatpush3.msra.mxu1 %v229_v31 }
  0x55   :  { %399 = vmatmul.mubr.f32.vlgmr.msra.gmra.mxu0 %v88_v17  ;;  %429 = vmatprep.subr.mxu1 %v561_v0 }
  0x56   :  { %430 = vmatpush3.msra.mxu1 %v228_v32 }
  0x57   :  { %431 = vmatprep.subr.mxu1 %v561_v0 }
  0x58   :  { %432 = vmatpush3.msra.mxu1 %v227_v33 }
 0x115   :  { %v176_v39 = vpop.f32.mrf.mxu0 }
 0x116   :  { %v177_v40 = vadd.f32 %v176_v39, %v109_v38 }
 0x117   :  { %v400_v41 = vpop.f32.mrf.mxu0 }
 0x118   :  { %v183_v42 = vrot.slane %v177_v40, %v108_v36 }
 0x11a   :  { %v184_v43 = vsub.f32 %v177_v40, %v183_v42 }
 0x11c   :  { %v185_v44 = vrot.slane %v184_v43, 4  ;;  %v191_v45 = vmul.f32 %v184_v43, %v184_v43 }
 0x11e   :  { %v186_v46 = vadd.f32 %v185_v44, %v184_v43  ;;  %v192_v47 = vrot.slane %v191_v45, 4 }
 0x120   :  { %v187_v48 = vrot.slane %v186_v46, 2  ;;  %v193_v49 = vadd.f32 %v192_v47, %v191_v45 }
 0x122   :  { %v188_v50 = vadd.f32 %v187_v48, %v186_v46  ;;  %v194_v51 = vrot.slane %v193_v49, 2 }
 0x124   :  { %v189_v52 = vrot.slane %v188_v50, 1  ;;  %v195_v53 = vadd.f32 %v194_v51, %v193_v49 }
 0x126   :  { %v190_v54 = vadd.f32 %v189_v52, %v188_v50  ;;  %v196_v55 = vrot.slane %v195_v53, 1 }
 0x128   :  { %v197_v56 = vadd.f32 %v196_v55, %v195_v53  ;;  %v198_v57 = vmul.f32 0.125, %v190_v54 }
 0x12a   :  { %v199_v58 = vmul.f32 0.125, %v197_v56  ;;  %v200_v59 = vmul.f32 %v198_v57, %v198_v57  ;;  %v206_v1 = vadd.f32 %v198_v57, %v177_v40 }
 0x12c   :  { %v201_v60 = vsub.f32 %v199_v58, %v200_v59 }
 0x12e   :  { %v202_v61 = vmax.f32 %v201_v60, 0.0 }
 0x130   :  { %v203_v62 = vadd.f32 1e-05, %v202_v61 }
 0x132   :  { %445 = vrsqrt.f32 %v203_v62 }
 0x13f   :  { %v446_v63 = vpop.eup %445 }
 0x140   :  { %v205_v0 = vmul.f32 %v446_v63, %v105_v37 }
 0x142   :  { %v208_v2 = vrot.slane %v205_v0, 1  ;;  %v218_v6 = vrot.slane %v205_v0, %v217_v3 }
 0x144   :  { %v210_v4 = vmul.f32 %v208_v2, %v206_v1  ;;  %v219_v9 = vmul.f32 %v218_v6, %v177_v40 }
 0x146   :  { %v212_v5 = vrot.slane %v210_v4, 6 }
 0x148   :  { %v214_v8 = vsub.f32 %v105_v37, %v212_v5 }
 0x14a   :  { %v223_v10 = vrot.slane %v214_v8, %v222_v7 }
 0x14c   :  { %v224_v11 = vadd.f32 %v223_v10, %v219_v9 }
 0x14e   :  { %v225_v12 = vmax.f32 %v224_v11, 0.0 }
 0x150   :  { %434 = vmatmul.mubr.f32.vlgmr.msra.gmra.mxu1 %v225_v12 }
 0x210   :  { %v309_v13 = vpop.f32.mrf.mxu1 }
 0x211   :  { %314 = vst [vmem:[#allocation10] sm:$0xff] %v309_v13 }
 0x212   :  { %v435_v14 = vpop.f32.mrf.mxu1 }
 0x213   :  { %538 = shalt.err (!%p535_p10)
}
 0x214   :  { %324 = dma.vmem_to_hbm [thread:$0]  %s322_s3, 128, %s648_s4, [#allocation4]  }
 0x215   :  { %553 = dma.done.wait [#allocation4], 128  }
 0x216   :  { %554 = vsyncadd [#allocation4], 4294967168 }
 0x217   :  { %328 = vsyncpa [#allocation3], 1 }
 0x218   :  { %329 = vsyncpa [#allocation6], 1 }
 0x219   :  { %330 = vsyncpa [#allocation9], 1 }
 0x21a   :  { %331 = vsyncpa [#allocation4], 1 }

</bundles_post_ra>
